<compile_context>
chip_gen: v5e
topology: v5e:2x2
jax: 0.10.0
libtpu: 0.0.40
codegen_flags: <defaults>
</compile_context>

<pallas_src>
import functools

import jax
import jax.numpy as jnp
from jax.experimental import pallas as pl
from jax.experimental.pallas import tpu as pltpu


def _fused_qnet_kernel(*refs, num_hidden: int):
    """refs = (state, action,
               w0_state, w0_action, b0,
               [w_i, b_i for hidden layers 1..num_hidden-1],
               w_last_row, b_last,
               out)."""
    state_ref, action_ref = refs[0], refs[1]
    o_ref = refs[-1]

    # ---- layer 0: fused concat via split matmuls, f32 MXU accumulation ----
    w0s_ref, w0a_ref, b0_ref = refs[2], refs[3], refs[4]
    h = (
        jnp.dot(state_ref[...], w0s_ref[...], preferred_element_type=jnp.float32)
        + jnp.dot(action_ref[...], w0a_ref[...], preferred_element_type=jnp.float32)
        + b0_ref[...]
    )
    h = jnp.maximum(h, 0.0)

    # ---- hidden layers 1..num_hidden-1 (activations never leave the kernel) ----
    idx = 5
    for _ in range(num_hidden - 1):
        w_ref, b_ref = refs[idx], refs[idx + 1]
        idx += 2
        h = jnp.dot(h, w_ref[...], preferred_element_type=jnp.float32) + b_ref[...]
        h = jnp.maximum(h, 0.0)

    # ---- final Linear(H, 1): elementwise mul + cross-lane reduce (VPU + XLU) ----
    wl_ref, bl_ref = refs[idx], refs[idx + 1]           # (1, H), (1, 1)
    q = jnp.sum(h * wl_ref[...], axis=-1, keepdims=True) + bl_ref[...]
    o_ref[...] = q.astype(o_ref.dtype)


def qnetwork_forward(params, state, action):
    """QNetwork.forward: concat last dim, Linear+ReLU stack, final Linear->1.

    params: list of (w, b) with w stored as (in_features, out_features).
    Returns (batch, 1).
    """
    assert len(params) >= 2, "expected at least one hidden layer + output layer"
    M, S = state.shape
    M2, A = action.shape
    assert M == M2
    num_hidden = len(params) - 1

    w0, b0 = params[0]
    assert w0.shape[0] == S + A

    # Build the flat input list for the fused kernel.
    inputs = [state, action, w0[:S, :], w0[S:, :], b0.reshape(1, -1)]
    for w, b in params[1:-1]:
        inputs.append(w)
        inputs.append(b.reshape(1, -1))
    w_last, b_last = params[-1]
    assert w_last.shape[1] == 1
    inputs.append(w_last.reshape(1, -1))   # (1, H_last) row for broadcast-mul
    inputs.append(b_last.reshape(1, 1))    # (1, 1)

    kernel = functools.partial(_fused_qnet_kernel, num_hidden=num_hidden)
    vmem = pltpu.MemorySpace.VMEM
    return pl.pallas_call(
        kernel,
        out_shape=jax.ShapeDtypeStruct((M, 1), state.dtype),
        in_specs=[pl.BlockSpec(memory_space=vmem) for _ in inputs],
        out_specs=pl.BlockSpec(memory_space=vmem),
    )(*inputs)


def init_qnetwork_params(key, state_dim, action_dim, hidden_dims):
    """Deterministic parameter init matching the PyTorch module's layer shapes.

    Weights are stored as (in_features, out_features) (i.e. PyTorch W.T).
    """
    params = []
    in_dim = state_dim + action_dim
    dims = list(hidden_dims) + [1]
    for out_dim in dims:
        key, kw, kb = jax.random.split(key, 3)
        bound = 1.0 / jnp.sqrt(in_dim)
        w = jax.random.uniform(
            kw, (in_dim, out_dim), jnp.float32, minval=-bound, maxval=bound
        )
        b = jax.random.uniform(
            kb, (out_dim,), jnp.float32, minval=-bound, maxval=bound
        )
        params.append((w, b))
        in_dim = out_dim
    return params


if __name__ == "__main__":
    batch = 8
    state_dim = 12
    action_dim = 4
    hidden_dims = (32, 32)

    key = jax.random.PRNGKey(0)
    k_params, k_state, k_action = jax.random.split(key, 3)

    params = init_qnetwork_params(k_params, state_dim, action_dim, hidden_dims)
    state = jax.random.normal(k_state, (batch, state_dim), jnp.float32)
    action = jax.random.normal(k_action, (batch, action_dim), jnp.float32)

    fwd = jax.jit(qnetwork_forward)
    q = fwd(params, state, action)
    q = jax.block_until_ready(q)

    # Sanity check against a pure-JAX reference of the same math.
    x_ref = jnp.concatenate([state, action], axis=-1)
    for li, (w, b) in enumerate(params):
        x_ref = x_ref @ w + b
        if li != len(params) - 1:
            x_ref = jnp.maximum(x_ref, 0.0)
    assert q.shape == (batch, 1)
    assert jnp.allclose(q, x_ref, atol=1e-5, rtol=1e-5)

    print("KERNEL_OK")
</pallas_src>

<mosaic_0001>
module attributes {stable_mosaic.version = 11 : i64} {
  func.func @_fused_qnet_kernel(%arg0: memref<8x12xf32, #tpu.memory_space<vmem>>, %arg1: memref<8x4xf32, #tpu.memory_space<vmem>>, %arg2: memref<12x32xf32, #tpu.memory_space<vmem>>, %arg3: memref<4x32xf32, #tpu.memory_space<vmem>>, %arg4: memref<1x32xf32, #tpu.memory_space<vmem>>, %arg5: memref<32x32xf32, #tpu.memory_space<vmem>>, %arg6: memref<1x32xf32, #tpu.memory_space<vmem>>, %arg7: memref<1x32xf32, #tpu.memory_space<vmem>>, %arg8: memref<1x1xf32, #tpu.memory_space<vmem>>, %arg9: memref<8x1xf32, #tpu.memory_space<vmem>>) attributes {dimension_semantics = [], scalar_prefetch = 0 : i64, scratch_operands = 0 : i64, tpu.core_type = #tpu.core_type<tc>} {
    %c0 = arith.constant 0 : index
    %c0_0 = arith.constant 0 : index
    %0 = vector.load %arg0[%c0, %c0_0] : memref<8x12xf32, #tpu.memory_space<vmem>>, vector<8x12xf32>
    %c0_1 = arith.constant 0 : index
    %c0_2 = arith.constant 0 : index
    %1 = vector.load %arg2[%c0_1, %c0_2] : memref<12x32xf32, #tpu.memory_space<vmem>>, vector<12x32xf32>
    %cst = arith.constant dense<0.000000e+00> : vector<8x32xf32>
    %2 = tpu.matmul %0, %1, %cst {dimension_numbers = #tpu.dot_dimension_numbers<[1], [0], [0], [1], [0, 0, 1, 1], [], []>} : vector<8x12xf32>, vector<12x32xf32>, vector<8x32xf32> -> vector<8x32xf32>
    %c0_3 = arith.constant 0 : index
    %c0_4 = arith.constant 0 : index
    %3 = vector.load %arg1[%c0_3, %c0_4] : memref<8x4xf32, #tpu.memory_space<vmem>>, vector<8x4xf32>
    %c0_5 = arith.constant 0 : index
    %c0_6 = arith.constant 0 : index
    %4 = vector.load %arg3[%c0_5, %c0_6] : memref<4x32xf32, #tpu.memory_space<vmem>>, vector<4x32xf32>
    %cst_7 = arith.constant dense<0.000000e+00> : vector<8x32xf32>
    %5 = tpu.matmul %3, %4, %cst_7 {dimension_numbers = #tpu.dot_dimension_numbers<[1], [0], [0], [1], [0, 0, 1, 1], [], []>} : vector<8x4xf32>, vector<4x32xf32>, vector<8x32xf32> -> vector<8x32xf32>
    %6 = arith.addf %2, %5 : vector<8x32xf32>
    %c0_8 = arith.constant 0 : index
    %c0_9 = arith.constant 0 : index
    %7 = vector.load %arg4[%c0_8, %c0_9] : memref<1x32xf32, #tpu.memory_space<vmem>>, vector<1x32xf32>
    %8 = vector.broadcast %7 : vector<1x32xf32> to vector<8x32xf32>
    %9 = arith.addf %6, %8 : vector<8x32xf32>
    %cst_10 = arith.constant 0.000000e+00 : f32
    %10 = vector.broadcast %cst_10 : f32 to vector<8x32xf32>
    %11 = arith.maximumf %9, %10 : vector<8x32xf32>
    %c0_11 = arith.constant 0 : index
    %c0_12 = arith.constant 0 : index
    %12 = vector.load %arg5[%c0_11, %c0_12] : memref<32x32xf32, #tpu.memory_space<vmem>>, vector<32x32xf32>
    %cst_13 = arith.constant dense<0.000000e+00> : vector<8x32xf32>
    %13 = tpu.matmul %11, %12, %cst_13 {dimension_numbers = #tpu.dot_dimension_numbers<[1], [0], [0], [1], [0, 0, 1, 1], [], []>} : vector<8x32xf32>, vector<32x32xf32>, vector<8x32xf32> -> vector<8x32xf32>
    %c0_14 = arith.constant 0 : index
    %c0_15 = arith.constant 0 : index
    %14 = vector.load %arg6[%c0_14, %c0_15] : memref<1x32xf32, #tpu.memory_space<vmem>>, vector<1x32xf32>
    %15 = vector.broadcast %14 : vector<1x32xf32> to vector<8x32xf32>
    %16 = arith.addf %13, %15 : vector<8x32xf32>
    %cst_16 = arith.constant 0.000000e+00 : f32
    %17 = vector.broadcast %cst_16 : f32 to vector<8x32xf32>
    %18 = arith.maximumf %16, %17 : vector<8x32xf32>
    %c0_17 = arith.constant 0 : index
    %c0_18 = arith.constant 0 : index
    %19 = vector.load %arg7[%c0_17, %c0_18] : memref<1x32xf32, #tpu.memory_space<vmem>>, vector<1x32xf32>
    %20 = vector.broadcast %19 : vector<1x32xf32> to vector<8x32xf32>
    %21 = arith.mulf %18, %20 : vector<8x32xf32>
    %cst_19 = arith.constant dense<0.000000e+00> : vector<8xf32>
    %22 = vector.multi_reduction <add>, %21, %cst_19 [1] : vector<8x32xf32> to vector<8xf32>
    %23 = vector.shape_cast %22 : vector<8xf32> to vector<8x1xf32>
    %c0_20 = arith.constant 0 : index
    %c0_21 = arith.constant 0 : index
    %24 = vector.load %arg8[%c0_20, %c0_21] : memref<1x1xf32, #tpu.memory_space<vmem>>, vector<1x1xf32>
    %25 = vector.broadcast %24 : vector<1x1xf32> to vector<8x1xf32>
    %26 = arith.addf %23, %25 : vector<8x1xf32>
    %c0_22 = arith.constant 0 : index
    %c0_23 = arith.constant 0 : index
    %27 = vector.load %arg9[%c0_22, %c0_23] : memref<8x1xf32, #tpu.memory_space<vmem>>, vector<8x1xf32>
    tpu.vector_store %arg9[%c0_22, %c0_23], %26 {strides = array<i32>} : memref<8x1xf32, #tpu.memory_space<vmem>>, vector<8x1xf32>,
    return
  }
}

</mosaic_0001>

<bundles_post_ra>
// kernel: qnetwork_forward.1
= control target key start
LH: loop header
LB: loop body
LE: loop exit
PB: predicated region body
PF: predicated region fallthrough
CT: control target
= control target key end

     0   :  { %s293_s0 = inlined_call_operand.vmem [shape: f32[8,12], index: 0, kind: input, shape index: {}]   ;;  %s294_s1 = inlined_call_operand.vmem [shape: f32[8,4], index: 1, kind: input, shape index: {}]   ;;  %s295_s2 = inlined_call_operand.vmem [shape: f32[12,32], index: 2, kind: input, shape index: {}]   ;;  %s296_s3 = inlined_call_operand.vmem [shape: f32[4,32], index: 3, kind: input, shape index: {}]   ;;  %s297_s4 = inlined_call_operand.vmem [shape: f32[1,32], index: 4, kind: input, shape index: {}]   ;;  %s298_s5 = inlined_call_operand.hbm [shape: f32[32,32], index: 5, kind: input, shape index: {}]   ;;  %s299_s6 = inlined_call_operand.vmem [shape: f32[1,32], index: 6, kind: input, shape index: {}]   ;;  %s300_s7 = inlined_call_operand.vmem [shape: f32[1,32], index: 7, kind: input, shape index: {}]   ;;  %s301_s8 = inlined_call_operand.<no memory space> [shape: f32[1,1], index: 8, kind: input, shape index: {}]   ;;  %s302_s9 = inlined_call_operand.vmem [shape: f32[8,1], index: 9, kind: output, shape index: {}]  }
   0x1   :  { %v14_v0 = vstv %s301_s8 }
   0x2   :  { %15 = vst [vmem:[#allocation2] sm:$0x1] %v14_v0 }
   0x3   :  { %16 = vsyncpa [#allocation4], 0  ;;  %s31_s13 = sshll.u32 %s298_s5, 4  ;;  %s207_s14 = smov [#allocation3]   ;;  %s32_s13 = int_to_ptr.hbm [resolvable:$true] %s31_s13 }
   0x4   :  { %s33_s15 = sshll.u32 %s207_s14, 4  ;;  %s208_s16 = smov 128   ;;  %s34_s15 = int_to_ptr.vmem [resolvable:$true] %s33_s15 }
   0x5   :  { %s209_s17 = smov 8  }
   0x6   :  { %39 = dma.hbm_to_vmem [thread:$0]  %s32_s13, 512, %s34_s15, [#allocation4], %s208_s16, %s208_s16, %s209_s17  }
   0x7   :  { %205 = dma.done.wait [#allocation4], 512  }
   0x8   :  { %206 = vsyncadd [#allocation4], 4294966784  ;;  %vm59_vm0 = vcmask 1043456   ;;  %vm55_vm1 = vcmask 31744   ;;  %v52_v1 = vld [vmem:[%s295_s2 + $0x8] sm:$0xf] }
   0x9   :  { %v54_v2 = vld [vmem:[%s296_s3] sm:$0xf]  ;;  %171 = vmatpush.msk.msra.mxu1 %vm59_vm0, %v52_v1  ;;  %vm83_vm2 = vcmask 97280   ;;  %v118_v7 = vld [vmem:[#allocation3 + $0x10] sm:$0xff]  ;;  %v117_v8 = vld [vmem:[#allocation3 + $0x8] sm:$0xff]  ;;  %vm124_vm3 = vcmask 261120  }
   0xa   :  { %v51_v3 = vld [vmem:[%s295_s2] sm:$0xff]  ;;  %169 = vmatpush.msk.msra.mxu0 %vm59_vm0, %v54_v2  ;;  %vm162_vm4 = vcmask 7168  }
   0xb   :  { %v53_v4 = vld [vmem:[%s294_s1] sm:$0xff]  ;;  %105 = vmatpush.msra.mxu1 %v51_v3 }
   0xc   :  { %v50_v5 = vld [vmem:[%s293_s0] sm:$0xff]  ;;  %170 = vmatmul.msk.f32.vlgmr.msra.gmra.mxu0 %vm55_vm1, %v53_v4 }
   0xd   :  { %172 = vmatmul.msk.f32.vlgmr.msra.gmra.mxu1 %vm83_vm2, %v50_v5  ;;  %v119_v6 = vld [vmem:[#allocation3 + $0x18] sm:$0xff]  ;;  %v116_v9 = vld [vmem:[#allocation3] sm:$0xff] }
   0xe   :  { %140 = vmatpush.msra.mxu2 %v119_v6  ;;  %v177_v11 = vld [vmem:[%s297_s4] ss:$0 sm:$0xff] }
   0xf   :  { %v178_v16 = vld [vmem:[%s299_s6] ss:$0 sm:$0xff] }
  0x10   :  { %141 = vmatpush.msra.mxu2 %v118_v7  ;;  %v179_v19 = vld [vmem:[%s300_s7] ss:$0 sm:$0xff] }
  0x11   :  { %v180_v23 = vld [vmem:[#allocation2] ss:$0 sm:$0xff] }
  0x12   :  { %142 = vmatpush.msra.mxu2 %v117_v8 }
  0x14   :  { %143 = vmatpush.msra.mxu2 %v116_v9 }
  0x89   :  { %v80_v10 = vpop.f32.mrf.mxu0 }
  0x8a   :  { %v107_v12 = vpop.f32.mrf.mxu1 }
  0x8b   :  { %v108_v13 = vadd.f32 %v107_v12, %v80_v10 }
  0x8d   :  { %v114_v14 = vadd.f32 %v177_v11, %v108_v13 }
  0x8f   :  { %v115_v15 = vmax.f32 %v114_v14, 0.0 }
  0x91   :  { %173 = vmatmul.msk.f32.vlgmr.msra.gmra.mxu2 %vm124_vm3, %v115_v15 }
 0x114   :  { %v145_v17 = vpop.f32.mrf.mxu2 }
 0x115   :  { %v146_v18 = vadd.f32 %v178_v16, %v145_v17 }
 0x117   :  { %v148_v20 = vmax.f32 %v146_v18, 0.0 }
 0x119   :  { %v153_v21 = vmul.f32 %v179_v19, %v148_v20 }
 0x11b   :  { %v154_v22 = vsel %vm124_vm3, %v153_v21, 0.0 }
 0x11c   :  { %155 = vadd.xlane.f32.xlu0 %v154_v22 }
 0x18f   :  { %v156_v24 = vpop.xlane.xlu0 %155 }
 0x190   :  { %v161_v25 = vadd.f32 %v180_v23, %v156_v24 }
 0x192   :  { %163 = vst.msk [vmem:[%s302_s9] sm:$0xff] %vm162_vm4, %v161_v25 }
 0x193   :  { %168 = vsyncpa [#allocation4], 1 }

</bundles_post_ra>
